<compile_context>
chip_gen: v7x
topology: tpu7x:2x2x1
jax: 0.10.0
libtpu: 0.0.40
codegen_flags: <defaults>
</compile_context>

<pallas_src>
import math

import jax
import jax.numpy as jnp
from jax.experimental import pallas as pl
from jax.experimental.pallas import tpu as pltpu


def _pe_kernel(x_ref, wt_ref, peb_ref, o_ref):
    # x_ref:   (S*B, D)  flattened input
    # wt_ref:  (D, D)    affinity weight, already transposed (in_dim, out_dim)
    # peb_ref: (S*B, D)  per-row constant: bias + positional encoding
    # o_ref:   (S*B, D)  output
    y = jnp.dot(x_ref[...], wt_ref[...], preferred_element_type=jnp.float32)
    o_ref[...] = (y + peb_ref[...]).astype(o_ref.dtype)


def make_sinusoidal_pe(max_len: int, d_model: int) -> jnp.ndarray:
    """pe[pos, 2i] = sin(pos / 10000^(2i/d)), pe[pos, 2i+1] = cos(...)."""
    position = jnp.arange(max_len, dtype=jnp.float32)[:, None]
    div_term = jnp.exp(
        jnp.arange(0, d_model, 2, dtype=jnp.float32) * (-math.log(10000.0) / d_model)
    )
    pe = jnp.zeros((max_len, d_model), dtype=jnp.float32)
    pe = pe.at[:, 0::2].set(jnp.sin(position * div_term))
    pe = pe.at[:, 1::2].set(jnp.cos(position * div_term))
    return pe


def positional_encoding_forward(x, w, b, pe):
    """x: (S, B, D); w: (D, D) nn.Linear weight (out,in); b: (D,); pe: (max_len, D)."""
    S, B, D = x.shape

    # --- wrapper-side glue (layout plumbing, not compute hoisting) ---
    x2d = x.reshape(S * B, D)                 # dense 2D slab for the kernel
    wt = w.T                                   # present weight as (in, out) for x @ wt
    # Fuse bias into the positional encoding: a (S*B, D) per-row constant.
    peb = jnp.broadcast_to((pe[:S, :] + b)[:, None, :], (S, B, D)).reshape(S * B, D)

    vmem = pl.BlockSpec(memory_space=pltpu.MemorySpace.VMEM)
    out2d = pl.pallas_call(
        _pe_kernel,
        out_shape=jax.ShapeDtypeStruct((S * B, D), x.dtype),
        in_specs=[vmem, vmem, vmem],
        out_specs=vmem,
    )(x2d, wt, peb)

    return out2d.reshape(S, B, D)


if __name__ == "__main__":
    # Small shapes: seq=16, batch=2, d_model=32, max_len=64.
    S, B, D, MAX_LEN = 16, 2, 32, 64

    key = jax.random.PRNGKey(0)
    kx, kw, kb = jax.random.split(key, 3)
    x = jax.random.normal(kx, (S, B, D), dtype=jnp.float32)
    # Deterministic affinity (nn.Linear(d_model, d_model)) params.
    bound = 1.0 / math.sqrt(D)
    w = jax.random.uniform(kw, (D, D), minval=-bound, maxval=bound, dtype=jnp.float32)
    b = jax.random.uniform(kb, (D,), minval=-bound, maxval=bound, dtype=jnp.float32)
    pe = make_sinusoidal_pe(MAX_LEN, D)

    out = positional_encoding_forward(x, w, b, pe)
    out = jax.block_until_ready(out)

    # Pure-JAX reference of the PyTorch forward (dropout p=0.0 => identity).
    ref = (jnp.einsum("sbd,ed->sbe", x, w) + b) + pe[:S, None, :]
    assert out.shape == (S, B, D)
    assert jnp.allclose(out, ref, atol=1e-5, rtol=1e-5), "mismatch vs reference"

    print("KERNEL_OK")
</pallas_src>

<mosaic_0001>
module attributes {stable_mosaic.version = 11 : i64} {
  func.func @_pe_kernel(%arg0: memref<32x32xf32, #tpu.memory_space<vmem>>, %arg1: memref<32x32xf32, #tpu.memory_space<vmem>>, %arg2: memref<32x32xf32, #tpu.memory_space<vmem>>, %arg3: memref<32x32xf32, #tpu.memory_space<vmem>>) attributes {dimension_semantics = [], scalar_prefetch = 0 : i64, scratch_operands = 0 : i64, tpu.core_type = #tpu.core_type<tc>} {
    %c0 = arith.constant 0 : index
    %c0_0 = arith.constant 0 : index
    %0 = vector.load %arg0[%c0, %c0_0] : memref<32x32xf32, #tpu.memory_space<vmem>>, vector<32x32xf32>
    %c0_1 = arith.constant 0 : index
    %c0_2 = arith.constant 0 : index
    %1 = vector.load %arg1[%c0_1, %c0_2] : memref<32x32xf32, #tpu.memory_space<vmem>>, vector<32x32xf32>
    %cst = arith.constant dense<0.000000e+00> : vector<32x32xf32>
    %2 = tpu.matmul %0, %1, %cst {dimension_numbers = #tpu.dot_dimension_numbers<[1], [0], [0], [1], [0, 0, 1, 1], [], []>} : vector<32x32xf32>, vector<32x32xf32>, vector<32x32xf32> -> vector<32x32xf32>
    %c0_3 = arith.constant 0 : index
    %c0_4 = arith.constant 0 : index
    %3 = vector.load %arg2[%c0_3, %c0_4] : memref<32x32xf32, #tpu.memory_space<vmem>>, vector<32x32xf32>
    %4 = arith.addf %2, %3 : vector<32x32xf32>
    %c0_5 = arith.constant 0 : index
    %c0_6 = arith.constant 0 : index
    %5 = vector.load %arg3[%c0_5, %c0_6] : memref<32x32xf32, #tpu.memory_space<vmem>>, vector<32x32xf32>
    tpu.vector_store %arg3[%c0_5, %c0_6], %4 {strides = array<i32>} : memref<32x32xf32, #tpu.memory_space<vmem>>, vector<32x32xf32>,
    return
  }
}

</mosaic_0001>

<bundles_post_ra>
// kernel: tpu_custom_call.1
= control target key start
LH: loop header
LB: loop body
LE: loop exit
PB: predicated region body
PF: predicated region fallthrough
CT: control target
= control target key end

     0   :  { %8 = vsyncpa [#allocation3], 0  ;;  %s427_s0 = inlined_call_operand.hbm [shape: f32[32,32], index: 0, kind: input, shape index: {}]   ;;  %s428_s1 = inlined_call_operand.hbm [shape: f32[32,32], index: 1, kind: input, shape index: {}]   ;;  %s429_s2 = inlined_call_operand.hbm [shape: f32[32,32], index: 2, kind: input, shape index: {}]   ;;  %s430_s3 = inlined_call_operand.hbm [shape: f32[32,32], index: 3, kind: output, shape index: {}]  }
   0x1   :  { %9 = vsyncpa [#allocation6], 0 }
   0x2   :  { %10 = vsyncpa [#allocation4], 0  ;;  %s326_s12 = smov [#allocation5]   ;;  %s327_s14 = smov [#allocation2]  }
   0x3   :  { %s28_s13 = sshll.u32 %s326_s12, 4  ;;  %s16_s15 = sshll.u32 %s327_s14, 4  ;;  %s29_s13 = int_to_ptr.vmem [resolvable:$true] %s28_s13  ;;  %s352_s15 = int_to_ptr.vmem [resolvable:$true] %s16_s15 }
   0x4   :  { %s232_s18 = scalar_lea.hbm %s428_s1, 512 }
   0x5   :  { %p233_p0 = scmp.ne.s32.totalorder %s428_s1, %s232_s18  ;;  %p236_p1 = scmp.lt.u32.totalorder %s232_s18, %s428_s1 }
   0x7   :  { %p238_p2 = pnand %p236_p1, %p233_p0 }
   0x9   :  { %241 = shalt.err (!%p238_p2)
}
   0xa   :  { %s242_s23 = scalar_lea.vmem %s29_s13, 512  ;;  %p247_p4 = scmp.lt.s32.totalorder %s29_s13, %s29_s13 }
   0xb   :  { %p243_p3 = scmp.ne.s32.totalorder %s29_s13, %s242_s23  ;;  %p248_p5 = scmp.lt.s32.totalorder %s242_s23, %s242_s23 }
   0xd   :  { %p249_p6 = por %p248_p5, %p247_p4 }
   0xf   :  { %p250_p7 = pnand %p249_p6, %p243_p3 }
  0x11   :  { %253 = shalt.err (!%p250_p7)
}
  0x12   :  { %s328_s24 = smov 128   ;;  %s329_s25 = smov 8  }
  0x13   :  { %34 = dma.hbm_to_vmem [thread:$0]  %s428_s1, 512, %s29_s13, [#allocation6], %s328_s24, %s328_s24, %s329_s25  }
  0x14   :  { %s254_s30 = scalar_lea.hbm %s427_s0, 512 }
  0x15   :  { %p255_p8 = scmp.ne.s32.totalorder %s427_s0, %s254_s30  ;;  %p258_p9 = scmp.lt.u32.totalorder %s254_s30, %s427_s0 }
  0x17   :  { %p260_p10 = pnand %p258_p9, %p255_p8 }
  0x19   :  { %263 = shalt.err (!%p260_p10)
}
  0x1a   :  { %s264_s8 = scalar_lea.vmem %s352_s15, 512  ;;  %p269_p12 = scmp.lt.s32.totalorder %s352_s15, %s352_s15 }
  0x1b   :  { %p265_p11 = scmp.ne.s32.totalorder %s352_s15, %s264_s8  ;;  %p270_p13 = scmp.lt.s32.totalorder %s264_s8, %s264_s8 }
  0x1d   :  { %p271_p0 = por %p270_p13, %p269_p12 }
  0x1f   :  { %p272_p1 = pnand %p271_p0, %p265_p11 }
  0x21   :  { %275 = shalt.err (!%p272_p1)
}
  0x22   :  { %22 = dma.hbm_to_vmem [thread:$0]  %s427_s0, 512, %s352_s15, [#allocation3], %s328_s24, %s328_s24, %s329_s25  }
  0x23   :  { %s330_s10 = smov [#allocation7]   ;;  %s276_s14 = scalar_lea.hbm %s429_s2, 512 }
  0x24   :  { %s40_s11 = sshll.u32 %s330_s10, 4  ;;  %p277_p2 = scmp.ne.s32.totalorder %s429_s2, %s276_s14  ;;  %s41_s11 = int_to_ptr.vmem [resolvable:$true] %s40_s11 }
  0x25   :  { %p280_p3 = scmp.lt.u32.totalorder %s276_s14, %s429_s2 }
  0x27   :  { %p282_p4 = pnand %p280_p3, %p277_p2 }
  0x29   :  { %285 = shalt.err (!%p282_p4)
}
  0x2a   :  { %s286_s20 = scalar_lea.vmem %s41_s11, 512  ;;  %p291_p6 = scmp.lt.s32.totalorder %s41_s11, %s41_s11 }
  0x2b   :  { %p287_p5 = scmp.ne.s32.totalorder %s41_s11, %s286_s20  ;;  %p292_p7 = scmp.lt.s32.totalorder %s286_s20, %s286_s20 }
  0x2d   :  { %p293_p8 = por %p292_p7, %p291_p6 }
  0x2f   :  { %p294_p9 = pnand %p293_p8, %p287_p5 }
  0x31   :  { %297 = shalt.err (!%p294_p9)
}
  0x32   :  { %46 = dma.hbm_to_vmem [thread:$0]  %s429_s2, 512, %s41_s11, [#allocation6], %s328_s24, %s328_s24, %s329_s25  }
  0x33   :  { %320 = dma.done.wait [#allocation3], 512  }
  0x34   :  { %321 = vsyncadd [#allocation3], 4294966784 }
  0x35   :  { %322 = dma.done.wait [#allocation6], 1024  }
  0x36   :  { %323 = vsyncadd [#allocation6], 4294966272  ;;  %vm68_vm0 = vcmask 261120   ;;  %v60_v0 = vld [vmem:[#allocation5] sm:$0xff]  ;;  %v61_v1 = vld [vmem:[#allocation5 + $0x8] sm:$0xff]  ;;  %s331_s2 = smov [#allocation8]  }
  0x37   :  { %v62_v2 = vld [vmem:[#allocation5 + $0x10] sm:$0xff]  ;;  %v214_v3 = vpack.c.bf16 %v61_v1, %v60_v0  ;;  %v63_v4 = vld [vmem:[#allocation5 + $0x18] sm:$0xff]  ;;  %v56_v5 = vld [vmem:[#allocation2] sm:$0xff]  ;;  %s175_s21 = sshll.u32 %s331_s2, 4  ;;  %s176_s21 = int_to_ptr.vmem [resolvable:$true] %s175_s21 }
  0x38   :  { %v58_v6 = vld [vmem:[#allocation2 + $0x10] sm:$0xff]  ;;  %v218_v7 = vpack.c.bf16 %v63_v4, %v62_v2  ;;  %208 = vmatprep.mubr.msk.f32.mxu0 %vm68_vm0, %v56_v5  ;;  %v57_v8 = vld [vmem:[#allocation2 + $0x8] sm:$0xff]  ;;  %v59_v9 = vld [vmem:[#allocation2 + $0x18] sm:$0xff]  ;;  %s298_s22 = scalar_lea.vmem %s176_s21, 512  ;;  %p303_p11 = scmp.lt.s32.totalorder %s176_s21, %s176_s21 }
  0x39   :  { %211 = vmatprep.mubr.msk.f32.mxu1 %vm68_vm0, %v58_v6  ;;  %215 = vmatprep.subr.bf16.mxu0 %v214_v3  ;;  %v65_v10 = vld [vmem:[#allocation7 + $0x8] sm:$0xff]  ;;  %v67_v11 = vld [vmem:[#allocation7 + $0x18] sm:$0xff]  ;;  %v64_v12 = vld [vmem:[#allocation7] sm:$0xff]  ;;  %p299_p10 = scmp.ne.s32.totalorder %s176_s21, %s298_s22  ;;  %p304_p12 = scmp.lt.s32.totalorder %s298_s22, %s298_s22 }
  0x3a   :  { %222 = vmatprep.subr.bf16.mxu1 %v214_v3  ;;  %217 = vmatpush3.bf16.msra.mxu0 %v214_v3  ;;  %v66_v13 = vld [vmem:[#allocation7 + $0x10] sm:$0xff] }
  0x3b   :  { %224 = vmatpush3.bf16.msra.mxu1 %v214_v3  ;;  %219 = vmatprep.subr.bf16.mxu0 %v218_v7  ;;  %p305_p13 = por %p304_p12, %p303_p11 }
  0x3c   :  { %223 = vmatprep.subr.bf16.mxu1 %v218_v7 }
  0x3d   :  { %p306_p0 = pnand %p305_p13, %p299_p10 }
  0x3e   :  { %221 = vmatpush3.bf16.msra.mxu0 %v218_v7 }
  0x3f   :  { %225 = vmatpush3.bf16.msra.mxu1 %v218_v7 }
  0x41   :  { %209 = vmatmul.mubr.msk.f32.vlgmr.msra.gmra.mrb[0].mxu0 %vm68_vm0, %v57_v8 }
  0x42   :  { %212 = vmatmul.mubr.msk.f32.vlgmr.msra.gmra.mrb[0].mxu1 %vm68_vm0, %v59_v9 }
 0x114   :  { %v210_v14 = vpop.f32.mrb[0].mxu0 }
 0x115   :  { %v213_v15 = vpop.f32.mrb[0].mxu1  ;;  %v153_v16 = vadd.f32 %v210_v14, %v65_v10  ;;  %v147_v18 = vpop.f32.mrb[1].mxu0 }
 0x116   :  { %v163_v17 = vadd.f32 %v213_v15, %v67_v11  ;;  %v157_v19 = vpop.f32.mrb[1].mxu1  ;;  %v148_v20 = vadd.f32 %v147_v18, %v64_v12 }
 0x117   :  { %v158_v21 = vadd.f32 %v157_v19, %v66_v13  ;;  %167 = vst.msk [vmem:[#allocation8 + $0x8] sm:$0xff] %vm68_vm0, %v153_v16 }
 0x118   :  { %169 = vst.msk [vmem:[#allocation8 + $0x18] sm:$0xff] %vm68_vm0, %v163_v17  ;;  %166 = vst.msk [vmem:[#allocation8] sm:$0xff] %vm68_vm0, %v148_v20 }
 0x119   :  { %168 = vst.msk [vmem:[#allocation8 + $0x10] sm:$0xff] %vm68_vm0, %v158_v21 }
 0x11a   :  { %309 = shalt.err (!%p306_p0)
}
 0x11b   :  { %s310_s27 = scalar_lea.hbm %s430_s3, 512 }
 0x11c   :  { %p311_p1 = scmp.ne.s32.totalorder %s430_s3, %s310_s27  ;;  %p314_p2 = scmp.lt.u32.totalorder %s310_s27, %s430_s3 }
 0x11e   :  { %p316_p3 = pnand %p314_p2, %p311_p1 }
 0x120   :  { %319 = shalt.err (!%p316_p3)
}
 0x121   :  { %181 = dma.vmem_to_hbm [thread:$0]  %s176_s21, 512, %s430_s3, [#allocation4], %s328_s24, %s328_s24, %s329_s25  }
 0x122   :  { %324 = dma.done.wait [#allocation4], 512  }
 0x123   :  { %325 = vsyncadd [#allocation4], 4294966784 }
 0x124   :  { %185 = vsyncpa [#allocation3], 1 }
 0x125   :  { %186 = vsyncpa [#allocation6], 1 }
 0x126   :  { %187 = vsyncpa [#allocation4], 1 }

</bundles_post_ra>
